<compile_context>
chip_gen: v5e
topology: v5e:2x2
jax: 0.10.0
libtpu: 0.0.40
codegen_flags: <defaults>
</compile_context>

<pallas_src>
import math
import functools

import jax
import jax.numpy as jnp
from jax.experimental import pallas as pl
from jax.experimental.pallas import tpu as pltpu


def _arc_margin_kernel(x_ref, w_ref, rxs_ref, lab_ref, out_ref, rw_ref, *,
                       mm_dtype, tile_c, cos_m, sin_m, s_sq, s_th, s_mm,
                       easy_margin):
    # ---- Once per class tile: per-class inverse weight norms -> (1, TILE_C) ---
    # Computed from the already-resident weight tile (zero extra HBM traffic).
    # The ones-row matmul produces the row-sums directly in the (1, TILE_C)
    # lane layout needed below (no cross-layout reshape).
    @pl.when(pl.program_id(1) == 0)
    def _():
        wf = w_ref[...].astype(jnp.float32)
        ssq = jax.lax.dot_general(
            jnp.ones((8, wf.shape[1]), jnp.float32), wf * wf,
            dimension_numbers=(((1,), (1,)), ((), ())),
            preferred_element_type=jnp.float32)          # (8, TILE_C), rows equal
        rw_ref[...] = jax.lax.rsqrt(jnp.maximum(ssq[0:1, :], 1e-24))

    # ---- MXU: raw dot products (NT layout, f32 accumulation) ------------------
    raw = jax.lax.dot_general(
        x_ref[...].astype(mm_dtype), w_ref[...].astype(mm_dtype),
        dimension_numbers=(((1,), (1,)), ((), ())),
        preferred_element_type=jnp.float32)              # (TILE_B, TILE_C)

    # scaled = s * cosine, via rank-1 scaling: per-row s/||x||, per-col 1/||w||.
    scaled = raw * rxs_ref[...] * rw_ref[...]

    # ---- Per-row margin correction, applied only at the target column --------
    col = jax.lax.broadcasted_iota(jnp.int32, (scaled.shape[0], tile_c), 1)
    mask = col == (lab_ref[...] - pl.program_id(0) * tile_c)      # (TILE_B, TILE_C)

    t_s = jnp.sum(jnp.where(mask, scaled, 0.0), axis=-1, keepdims=True)  # s*cos(t)
    sine_s = jnp.sqrt(jnp.maximum(s_sq - t_s * t_s, 0.0))                # s*sin(t)
    phi_s = t_s * cos_m - sine_s * sin_m                                 # s*cos(t+m)
    if easy_margin:
        phi_s = jnp.where(t_s > 0.0, phi_s, t_s)
    else:
        phi_s = jnp.where(t_s > s_th, phi_s, t_s - s_mm)

    out = scaled + jnp.where(mask, phi_s - t_s, 0.0)
    out_ref[...] = out.astype(out_ref.dtype)


def arc_margin_product(x, weight, label=None, *, s=30.0, m=0.3, easy_margin=False,
                       max_tile_b=256, max_tile_c=1024, bf16_matmul=False,
                       vmem_limit_bytes=48 * 1024 * 1024):
    """ArcMarginProduct.forward(input, label). label=None -> inference (cosine)."""
    B, D = x.shape
    C, D2 = weight.shape
    assert D == D2, "feature dims of input and weight must match"

    if label is None:
        # inference(): plain cosine similarity == same kernel with s=1 and a
        # label that never matches any class column.
        label = jnp.full((B,), -1, dtype=jnp.int32)
        s = 1.0
    s = float(s)

    # --- Tile selection (sweepable per generation; defaults suit v6e/v7x) ------
    sub = 8 * max(1, 4 // jnp.dtype(x.dtype).itemsize)        # 8 (f32) / 16 (bf16)
    TILE_B = B if B <= max_tile_b else max(sub, (max_tile_b // sub) * sub)
    TILE_C = C if C <= max_tile_c else max(128, (max_tile_c // 128) * 128)
    num_c = pl.cdiv(C, TILE_C)
    num_b = pl.cdiv(B, TILE_B)

    # --- Tiny wrapper-side precompute: per-row s/||x|| (f32) --------------------
    xf = x.astype(jnp.float32)
    rxs = s * jax.lax.rsqrt(
        jnp.maximum(jnp.sum(xf * xf, axis=1, keepdims=True), 1e-24))   # (B, 1)
    lab2d = label.reshape(B, 1).astype(jnp.int32)

    mm_dtype = jnp.bfloat16 if (bf16_matmul and x.dtype == jnp.float32) else x.dtype

    kernel = functools.partial(
        _arc_margin_kernel,
        mm_dtype=mm_dtype,
        tile_c=TILE_C,
        cos_m=math.cos(m),
        sin_m=math.sin(m),
        s_sq=s * s,
        s_th=s * math.cos(math.pi - m),
        s_mm=s * math.sin(math.pi - m) * m,
        easy_margin=bool(easy_margin),
    )

    return pl.pallas_call(
        kernel,
        out_shape=jax.ShapeDtypeStruct((B, C), x.dtype),
        grid=(num_c, num_b),
        in_specs=[
            pl.BlockSpec((TILE_B, D), lambda c, b: (b, 0)),     # x tile
            pl.BlockSpec((TILE_C, D), lambda c, b: (c, 0)),     # weight tile
            pl.BlockSpec((TILE_B, 1), lambda c, b: (b, 0)),     # s/||x|| rows
            pl.BlockSpec((TILE_B, 1), lambda c, b: (b, 0)),     # labels
        ],
        out_specs=pl.BlockSpec((TILE_B, TILE_C), lambda c, b: (b, c)),
        scratch_shapes=[pltpu.VMEM((1, TILE_C), jnp.float32)],  # cached 1/||w||
        compiler_params=pltpu.CompilerParams(
            dimension_semantics=("parallel", "arbitrary"),
            vmem_limit_bytes=vmem_limit_bytes),
    )(x, weight, rxs, lab2d)


# ------------------------------ pure-JAX reference ------------------------------
def _reference(x, weight, label, *, s=30.0, m=0.3, easy_margin=False):
    x = x.astype(jnp.float32)
    weight = weight.astype(jnp.float32)
    xn = x / jnp.maximum(jnp.linalg.norm(x, axis=1, keepdims=True), 1e-12)
    wn = weight / jnp.maximum(jnp.linalg.norm(weight, axis=1, keepdims=True), 1e-12)
    cosine = xn @ wn.T
    sine = jnp.sqrt(jnp.clip(1.0 - cosine ** 2, 0.0, 1.0))
    phi = cosine * math.cos(m) - sine * math.sin(m)
    if easy_margin:
        phi = jnp.where(cosine > 0, phi, cosine)
    else:
        phi = jnp.where(cosine > math.cos(math.pi - m),
                        phi, cosine - math.sin(math.pi - m) * m)
    one_hot = jax.nn.one_hot(label, weight.shape[0], dtype=cosine.dtype)
    return (one_hot * phi + (1.0 - one_hot) * cosine) * s


def _xavier_uniform(key, out_features, in_features, dtype=jnp.float32):
    bound = math.sqrt(6.0 / (in_features + out_features))
    w = jax.random.uniform(key, (out_features, in_features), dtype=jnp.float32,
                           minval=-bound, maxval=bound)
    return w.astype(dtype)


if __name__ == "__main__":
    key = jax.random.PRNGKey(0)

    # ---- Test 1: single-tile exact shapes + inference path (f32) ---------------
    B, D, C = 8, 32, 16
    k1, k2, k3, key = jax.random.split(key, 4)
    x = jax.random.normal(k1, (B, D), dtype=jnp.float32)
    w = _xavier_uniform(k2, C, D)
    lab = jax.random.randint(k3, (B,), 0, C, dtype=jnp.int32)

    out = jax.block_until_ready(arc_margin_product(x, w, lab, s=30.0, m=0.3))
    ref = _reference(x, w, lab, s=30.0, m=0.3)
    assert out.shape == (B, C) and out.dtype == x.dtype
    assert jnp.allclose(out, ref, atol=2e-3, rtol=2e-3), (
        f"max abs err {float(jnp.max(jnp.abs(out - ref)))}")

    out_inf = jax.block_until_ready(arc_margin_product(x, w, None))
    xn = x / jnp.maximum(jnp.linalg.norm(x, axis=1, keepdims=True), 1e-12)
    wn = w / jnp.maximum(jnp.linalg.norm(w, axis=1, keepdims=True), 1e-12)
    assert jnp.allclose(out_inf, xn @ wn.T, atol=2e-3, rtol=2e-3)

    # ---- Test 2: multi-tile grid with ragged last blocks on BOTH axes (f32) ----
    B2, D2, C2 = 20, 40, 200
    k1, k2, k3, key = jax.random.split(key, 4)
    x2 = jax.random.normal(k1, (B2, D2), dtype=jnp.float32)
    w2 = _xavier_uniform(k2, C2, D2)
    lab2 = jax.random.randint(k3, (B2,), 0, C2, dtype=jnp.int32)

    out2 = jax.block_until_ready(
        arc_margin_product(x2, w2, lab2, easy_margin=True,
                           max_tile_b=8, max_tile_c=128))
    ref2 = _reference(x2, w2, lab2, easy_margin=True)
    assert out2.shape == (B2, C2)
    assert jnp.allclose(out2, ref2, atol=2e-3, rtol=2e-3), (
        f"max abs err {float(jnp.max(jnp.abs(out2 - ref2)))}")

    # ---- Test 3: bf16 inputs -> bf16 output (native bf16 MXU, narrow writes) ---
    B3, D3, C3 = 16, 64, 256
    k1, k2, k3, key = jax.random.split(key, 4)
    x3 = jax.random.normal(k1, (B3, D3), dtype=jnp.float32).astype(jnp.bfloat16)
    w3 = _xavier_uniform(k2, C3, D3, dtype=jnp.bfloat16)
    lab3 = jax.random.randint(k3, (B3,), 0, C3, dtype=jnp.int32)

    out3 = jax.block_until_ready(arc_margin_product(x3, w3, lab3))
    ref3 = _reference(x3, w3, lab3)
    assert out3.dtype == jnp.bfloat16
    assert jnp.allclose(out3.astype(jnp.float32), ref3, atol=0.25, rtol=0.02), (
        f"max abs err {float(jnp.max(jnp.abs(out3.astype(jnp.float32) - ref3)))}")

    # ---- Test 4: f32 inputs with in-kernel bf16 cast for the MXU (perf knob) ---
    out4 = jax.block_until_ready(
        arc_margin_product(x2, w2, lab2, easy_margin=False, bf16_matmul=True))
    ref4 = _reference(x2, w2, lab2, easy_margin=False)
    assert jnp.allclose(out4, ref4, atol=0.5, rtol=0.05), (
        f"max abs err {float(jnp.max(jnp.abs(out4 - ref4)))}")

    print("KERNEL_OK")
</pallas_src>

<mosaic_0001>
module attributes {stable_mosaic.version = 11 : i64} {
  func.func @_arc_margin_kernel(%arg0: i32, %arg1: i32, %arg2: memref<8x32xf32, #tpu.memory_space<vmem>>, %arg3: memref<16x32xf32, #tpu.memory_space<vmem>>, %arg4: memref<8x1xf32, #tpu.memory_space<vmem>>, %arg5: memref<8x1xi32, #tpu.memory_space<vmem>>, %arg6: memref<8x16xf32, #tpu.memory_space<vmem>>, %arg7: memref<1x16xf32, #tpu.memory_space<vmem>>) attributes {dimension_semantics = [#tpu.dimension_semantics<parallel>, #tpu.dimension_semantics<arbitrary>], iteration_bounds = array<i64: 1, 1>, scalar_prefetch = 0 : i64, scratch_operands = 1 : i64, tpu.core_type = #tpu.core_type<tc>, window_params = [{transform_indices = @transform_0, window_bounds = array<i64: 8, 32>}, {transform_indices = @transform_1, window_bounds = array<i64: 16, 32>}, {transform_indices = @transform_2, window_bounds = array<i64: 8, 1>}, {transform_indices = @transform_3, window_bounds = array<i64: 8, 1>}, {transform_indices = @transform_4, window_bounds = array<i64: 8, 16>}]} {
    %c0_i32 = arith.constant 0 : i32
    %0 = arith.cmpi eq, %arg1, %c0_i32 : i32
    %1 = arith.extui %0 : i1 to i32
    %c0_i32_0 = arith.constant 0 : i32
    %2 = arith.cmpi ne, %1, %c0_i32_0 : i32
    scf.if %2 {
      %c0_21 = arith.constant 0 : index
      %c0_22 = arith.constant 0 : index
      %46 = vector.load %arg3[%c0_21, %c0_22] : memref<16x32xf32, #tpu.memory_space<vmem>>, vector<16x32xf32>
      %cst_23 = arith.constant 1.000000e+00 : f32
      %47 = vector.broadcast %cst_23 : f32 to vector<8x32xf32>
      %48 = arith.mulf %46, %46 : vector<16x32xf32>
      %cst_24 = arith.constant dense<0.000000e+00> : vector<8x16xf32>
      %49 = tpu.matmul %47, %48, %cst_24 {dimension_numbers = #tpu.dot_dimension_numbers<[1], [1], [0], [0], [0, 0, 1, 0], [], []>} : vector<8x32xf32>, vector<16x32xf32>, vector<8x16xf32> -> vector<8x16xf32>
      %50 = vector.extract_strided_slice %49 {offsets = [0, 0], sizes = [1, 16], strides = [1, 1]} : vector<8x16xf32> to vector<1x16xf32>
      %cst_25 = arith.constant 1.000000e-24 : f32
      %51 = vector.broadcast %cst_25 : f32 to vector<1x16xf32>
      %52 = arith.maximumf %50, %51 : vector<1x16xf32>
      %53 = math.rsqrt %52 : vector<1x16xf32>
      %c0_26 = arith.constant 0 : index
      %c0_27 = arith.constant 0 : index
      %54 = vector.load %arg7[%c0_26, %c0_27] : memref<1x16xf32, #tpu.memory_space<vmem>>, vector<1x16xf32>
      tpu.vector_store %arg7[%c0_26, %c0_27], %53 {strides = array<i32>} : memref<1x16xf32, #tpu.memory_space<vmem>>, vector<1x16xf32>,
    } else {
    }
    %c0 = arith.constant 0 : index
    %c0_1 = arith.constant 0 : index
    %3 = vector.load %arg2[%c0, %c0_1] : memref<8x32xf32, #tpu.memory_space<vmem>>, vector<8x32xf32>
    %c0_2 = arith.constant 0 : index
    %c0_3 = arith.constant 0 : index
    %4 = vector.load %arg3[%c0_2, %c0_3] : memref<16x32xf32, #tpu.memory_space<vmem>>, vector<16x32xf32>
    %cst = arith.constant dense<0.000000e+00> : vector<8x16xf32>
    %5 = tpu.matmul %3, %4, %cst {dimension_numbers = #tpu.dot_dimension_numbers<[1], [1], [0], [0], [0, 0, 1, 0], [], []>} : vector<8x32xf32>, vector<16x32xf32>, vector<8x16xf32> -> vector<8x16xf32>
    %c0_4 = arith.constant 0 : index
    %c0_5 = arith.constant 0 : index
    %6 = vector.load %arg4[%c0_4, %c0_5] : memref<8x1xf32, #tpu.memory_space<vmem>>, vector<8x1xf32>
    %7 = vector.broadcast %6 : vector<8x1xf32> to vector<8x16xf32>
    %8 = arith.mulf %5, %7 : vector<8x16xf32>
    %c0_6 = arith.constant 0 : index
    %c0_7 = arith.constant 0 : index
    %9 = vector.load %arg7[%c0_6, %c0_7] : memref<1x16xf32, #tpu.memory_space<vmem>>, vector<1x16xf32>
    %10 = vector.broadcast %9 : vector<1x16xf32> to vector<8x16xf32>
    %11 = arith.mulf %8, %10 : vector<8x16xf32>
    %12 = tpu.iota {dimensions = array<i32: 1>} : vector<8x16xi32>
    %c0_8 = arith.constant 0 : index
    %c0_9 = arith.constant 0 : index
    %13 = vector.load %arg5[%c0_8, %c0_9] : memref<8x1xi32, #tpu.memory_space<vmem>>, vector<8x1xi32>
    %c16_i32 = arith.constant 16 : i32
    %14 = arith.muli %arg0, %c16_i32 : i32
    %15 = vector.broadcast %14 : i32 to vector<8x1xi32>
    %16 = arith.subi %13, %15 : vector<8x1xi32>
    %17 = vector.broadcast %16 : vector<8x1xi32> to vector<8x16xi32>
    %18 = arith.cmpi eq, %12, %17 : vector<8x16xi32>
    %cst_10 = arith.constant 0.000000e+00 : f32
    %19 = vector.broadcast %cst_10 : f32 to vector<8x16xf32>
    %20 = arith.select %18, %11, %19 : vector<8x16xi1>, vector<8x16xf32>
    %cst_11 = arith.constant dense<0.000000e+00> : vector<8xf32>
    %21 = vector.multi_reduction <add>, %20, %cst_11 [1] : vector<8x16xf32> to vector<8xf32>
    %22 = vector.shape_cast %21 : vector<8xf32> to vector<8x1xf32>
    %23 = arith.mulf %22, %22 : vector<8x1xf32>
    %cst_12 = arith.constant 9.000000e+02 : f32
    %24 = vector.broadcast %cst_12 : f32 to vector<8x1xf32>
    %25 = arith.subf %24, %23 : vector<8x1xf32>
    %cst_13 = arith.constant 0.000000e+00 : f32
    %26 = vector.broadcast %cst_13 : f32 to vector<8x1xf32>
    %27 = arith.maximumf %25, %26 : vector<8x1xf32>
    %28 = math.sqrt %27 : vector<8x1xf32>
    %cst_14 = arith.constant 0.955336511 : f32
    %29 = vector.broadcast %cst_14 : f32 to vector<8x1xf32>
    %30 = arith.mulf %22, %29 : vector<8x1xf32>
    %cst_15 = arith.constant 0.295520216 : f32
    %31 = vector.broadcast %cst_15 : f32 to vector<8x1xf32>
    %32 = arith.mulf %28, %31 : vector<8x1xf32>
    %33 = arith.subf %30, %32 : vector<8x1xf32>
    %cst_16 = arith.constant -28.6600952 : f32
    %34 = vector.broadcast %cst_16 : f32 to vector<8x1xf32>
    %35 = arith.cmpf ogt, %22, %34 : vector<8x1xf32>
    %cst_17 = arith.constant 2.6596818 : f32
    %36 = vector.broadcast %cst_17 : f32 to vector<8x1xf32>
    %37 = arith.subf %22, %36 : vector<8x1xf32>
    %38 = arith.select %35, %33, %37 : vector<8x1xi1>, vector<8x1xf32>
    %39 = arith.subf %38, %22 : vector<8x1xf32>
    %cst_18 = arith.constant 0.000000e+00 : f32
    %40 = vector.shape_cast %39 : vector<8x1xf32> to vector<8x1xf32>
    %41 = vector.broadcast %40 : vector<8x1xf32> to vector<8x16xf32>
    %42 = vector.broadcast %cst_18 : f32 to vector<8x16xf32>
    %43 = arith.select %18, %41, %42 : vector<8x16xi1>, vector<8x16xf32>
    %44 = arith.addf %11, %43 : vector<8x16xf32>
    %c0_19 = arith.constant 0 : index
    %c0_20 = arith.constant 0 : index
    %45 = vector.load %arg6[%c0_19, %c0_20] : memref<8x16xf32, #tpu.memory_space<vmem>>, vector<8x16xf32>
    tpu.vector_store %arg6[%c0_19, %c0_20], %44 {strides = array<i32>} : memref<8x16xf32, #tpu.memory_space<vmem>>, vector<8x16xf32>,
    return
  }
  func.func @transform_0(%arg0: i32, %arg1: i32) -> (i32, i32) {
    %c0_i32 = arith.constant 0 : i32
    %c0_i32_0 = arith.constant 0 : i32
    return %arg1, %c0_i32 : i32, i32
  }
  func.func @transform_1(%arg0: i32, %arg1: i32) -> (i32, i32) {
    %c0_i32 = arith.constant 0 : i32
    %c0_i32_0 = arith.constant 0 : i32
    return %arg0, %c0_i32 : i32, i32
  }
  func.func @transform_2(%arg0: i32, %arg1: i32) -> (i32, i32) {
    %c0_i32 = arith.constant 0 : i32
    %c0_i32_0 = arith.constant 0 : i32
    return %arg1, %c0_i32 : i32, i32
  }
  func.func @transform_3(%arg0: i32, %arg1: i32) -> (i32, i32) {
    %c0_i32 = arith.constant 0 : i32
    %c0_i32_0 = arith.constant 0 : i32
    return %arg1, %c0_i32 : i32, i32
  }
  func.func @transform_4(%arg0: i32, %arg1: i32) -> (i32, i32) {
    %c0_i32 = arith.constant 0 : i32
    return %arg1, %arg0 : i32, i32
  }
}

</mosaic_0001>

<bundles_post_ra>
// kernel: tpu_custom_call.1
= control target key start
LH: loop header
LB: loop body
LE: loop exit
PB: predicated region body
PF: predicated region fallthrough
CT: control target
= control target key end

     0   :  { %9 = vsyncpa [#allocation4], 0  ;;  %s305_s0 = inlined_call_operand.hbm [shape: f32[8,32], index: 0, kind: input, shape index: {}]   ;;  %s306_s1 = inlined_call_operand.vmem [shape: f32[16,32], index: 1, kind: input, shape index: {}]   ;;  %s307_s2 = inlined_call_operand.vmem [shape: f32[8,1], index: 2, kind: input, shape index: {}]   ;;  %s308_s3 = inlined_call_operand.vmem [shape: s32[8,1], index: 3, kind: input, shape index: {}]   ;;  %s309_s4 = inlined_call_operand.hbm [shape: f32[8,16], index: 4, kind: output, shape index: {}]  }
   0x1   :  { %10 = vsyncpa [#allocation5], 0  ;;  %s16_s17 = sshll.u32 %s305_s0, 4  ;;  %s254_s18 = smov [#allocation3]   ;;  %s17_s17 = int_to_ptr.hbm [resolvable:$true] %s16_s17 }
   0x2   :  { %s18_s19 = sshll.u32 %s254_s18, 4  ;;  %s19_s19 = int_to_ptr.vmem [resolvable:$true] %s18_s19 }
   0x3   :  { %21 = dma.hbm_to_vmem [thread:$0]  %s17_s17, 128, %s19_s19, [#allocation4]  }
   0x4   :  { %250 = dma.done.wait [#allocation4], 128  }
   0x5   :  { %251 = vsyncadd [#allocation4], 4294967168  ;;  %v255_v0 = vmov 0   ;;  %v37_v1 = vld [vmem:[%s306_s1 + $0x8] sm:$0xff]  ;;  %vm40_vm0 = vcmask 261120   ;;  %v36_v2 = vld [vmem:[%s306_s1] sm:$0xff]  ;;  %v128_v19 = vlaneseq }
   0x6   :  { %196 = vset.pattern.permute.xlu0 %v255_v0  ;;  %v39_v3 = vmul.f32 %v37_v1, %v37_v1  ;;  %188 = vmatpush.xpose.msk.msra.mxu1 %vm40_vm0, %v37_v1  ;;  %v116_v4 = vld [vmem:[%s307_s2] sm:$0xff]  ;;  %v38_v5 = vmul.f32 %v36_v2, %v36_v2  ;;  %v256_v8 = vmov 1.0   ;;  %vm81_vm3 = vcmask 122880   ;;  %s257_s1 = smov [#allocation6]   ;;  %s175_s28 = sshll.u32 %s309_s4, 4  ;;  %s176_s28 = int_to_ptr.hbm [resolvable:$true] %s175_s28 }
   0x7   :  { %119 = vperm.xlu0 %196, %v116_v4   ;;  %v83_v6 = vld [vmem:[#allocation3] sm:$0xff]  ;;  %v129_v21 = vand.u32 127, %v128_v19  ;;  %vm139_vm5 = vcmask 130048   ;;  %s173_s2 = sshll.u32 %s257_s1, 4  ;;  %s174_s2 = int_to_ptr.vmem [resolvable:$true] %s173_s2 }
   0x8   :  { %185 = vmatpush.xpose.msk.msra.mxu0 %vm40_vm0, %v39_v3  ;;  %v130_v7 = vld [vmem:[%s308_s3] sm:$0xff] }
   0xa   :  { %189 = vmatpush.xpose.msk.msra.mxu1 %vm40_vm0, %v36_v2 }
   0xc   :  { %186 = vmatpush.xpose.msk.msra.mxu0 %vm40_vm0, %v38_v5 }
   0xd   :  { %190 = vmatmul.msk.f32.vlgmr.msra.gmra.mxu1 %vm40_vm0, %v83_v6 }
   0xf   :  { %187 = vmatmul.msk.f32.vlgmr.msra.gmra.mxu0 %vm40_vm0, %v256_v8  ;;  %135 = vperm.xlu0 %196, %v130_v7  }
  0x79   :  { %v120_v17 = vpop.permute.xlu0 %119 }
  0x81   :  { %v136_v22 = vpop.permute.xlu0 %135 }
  0x82   :  { %vm137_vm6 = vcmp.eq.s32.totalorder %v129_v21, %v136_v22 }
  0x8a   :  { %v113_v20 = vpop.f32.mrf.mxu1 }
  0x8b   :  { %v122_v23 = vmul.f32 %v120_v17, %v113_v20 }
  0x8c   :  { %v67_v9 = vpop.f32.mrf.mxu0 }
  0x8d   :  { %v70_v10 = vmax.f32 %v67_v9, 1e-24 }
  0x8f   :  { %198 = vrsqrt.f32 %v70_v10  ;;  %vm77_vm2 = vweird.f32 %v70_v10 }
  0x95   :  { %v199_v11 = vpop.eup %198 }
  0x96   :  { %v72_v12 = vmul.f32 %v199_v11, %v70_v10  ;;  %vm78_vm1 = vweird.f32 %v199_v11 }
  0x97   :  { %vm79_vm4 = vmor %vm77_vm2, %vm78_vm1 }
  0x98   :  { %v73_v13 = vmul.f32 %v199_v11, %v72_v12 }
  0x9a   :  { %v74_v14 = vmul.f32 0.5, %v73_v13 }
  0x9c   :  { %v75_v15 = vsub.f32 1.5, %v74_v14 }
  0x9e   :  { %v76_v16 = vmul.f32 %v199_v11, %v75_v15 }
  0xa0   :  { %v80_v18 = vsel %vm79_vm4, %v199_v11, %v76_v16 }
  0xa1   :  { %82 = vst.msk [vmem:[#allocation2] sm:$0x1] %vm81_vm3, %v80_v18 }
  0xa8   :  { %v197_v24 = vld [vmem:[#allocation2] ss:$0 sm:$0xff] }
  0xa9   :  { %v127_v25 = vmul.f32 %v197_v24, %v122_v23 }
  0xab   :  { %v138_v26 = vsel %vm137_vm6, %v127_v25, 0.0 }
  0xac   :  { %v140_v27 = vsel %vm139_vm5, %v138_v26, 0.0 }
  0xad   :  { %141 = vadd.xlane.f32.xlu1 %v140_v27 }
 0x120   :  { %v142_v28 = vpop.xlane.xlu1 %141 }
 0x121   :  { %v143_v29 = vmul.f32 %v142_v28, %v142_v28  ;;  %v158_v42 = vmul.f32 0.9553365, %v142_v28  ;;  %v191_v45 = vadd.f32 -2.6596818, %v142_v28  ;;  %vm161_vm9 = vcmp.gt.f32.partialorder %v142_v28, -28.660095 }
 0x123   :  { %v144_v30 = vsub.f32 900.0, %v143_v29 }
 0x125   :  { %v145_v31 = vmax.f32 %v144_v30, 0.0 }
 0x127   :  { %200 = vrsqrt.f32 %v145_v31  ;;  %vm153_vm7 = vcmp.eq.f32.partialorder %v145_v31, inf  ;;  %v156_v39 = vand.u32 2147483648, %v145_v31  ;;  %vm155_vm8 = vcmp.eq.f32.partialorder %v145_v31, 0.0 }
 0x12d   :  { %v201_v32 = vpop.eup %200 }
 0x12e   :  { %v147_v33 = vmul.f32 %v201_v32, %v145_v31 }
 0x130   :  { %v148_v34 = vmul.f32 %v201_v32, %v147_v33 }
 0x132   :  { %v149_v35 = vmul.f32 0.5, %v148_v34 }
 0x134   :  { %v150_v36 = vsub.f32 1.5, %v149_v35 }
 0x136   :  { %v151_v37 = vmul.f32 %v201_v32, %v150_v36 }
 0x138   :  { %v152_v38 = vmul.f32 %v151_v37, %v145_v31 }
 0x13a   :  { %v154_v40 = vsel %vm153_vm7, %v145_v31, %v152_v38 }
 0x13b   :  { %v157_v41 = vsel %vm155_vm8, %v156_v39, %v154_v40 }
 0x13c   :  { %v159_v43 = vmul.f32 0.29552022, %v157_v41 }
 0x13e   :  { %v160_v44 = vsub.f32 %v158_v42, %v159_v43 }
 0x140   :  { %v163_v46 = vsel %vm161_vm9, %v160_v44, %v191_v45 }
 0x141   :  { %v164_v47 = vsub.f32 %v163_v46, %v142_v28 }
 0x143   :  { %v165_v48 = vsel %vm137_vm6, %v164_v47, 0.0 }
 0x144   :  { %v166_v49 = vadd.f32 %v165_v48, %v127_v25 }
 0x146   :  { %167 = vst.msk [vmem:[#allocation6] sm:$0xff] %vm139_vm5, %v166_v49 }
 0x147   :  { %178 = dma.vmem_to_hbm [thread:$0]  %s174_s2, 128, %s176_s28, [#allocation5]  }
 0x148   :  { %252 = dma.done.wait [#allocation5], 128  }
 0x149   :  { %253 = vsyncadd [#allocation5], 4294967168 }
 0x14a   :  { %183 = vsyncpa [#allocation4], 1 }
 0x14b   :  { %184 = vsyncpa [#allocation5], 1 }

</bundles_post_ra>
